<compile_context>
chip_gen: v7x
topology: tpu7x:2x2x1
jax: 0.10.0
libtpu: 0.0.40
codegen_flags: <defaults>
</compile_context>

<pallas_src>
import functools

import numpy as np
import jax
import jax.numpy as jnp
from jax import lax
from jax.experimental import pallas as pl
from jax.experimental.pallas import tpu as pltpu


# ----------------------------------------------------------------------------
# Static (shape-only) nearest-topK index computation, numpy replica of
# get_topk_closest_indice from the PyTorch reference.
# ----------------------------------------------------------------------------
def _get_topk_closest_indice(q_windows, k_windows, topk):
    coords_q = np.arange(q_windows)
    if q_windows != k_windows:
        factor = k_windows // q_windows
        coords_q = coords_q * factor + factor // 2
    coords_k = np.arange(k_windows)
    rel = coords_q[:, None] - coords_k[None, :]
    dist = np.abs(rel)
    topk = min(topk, dist.shape[1])
    # TODO(synk): torch.topk's tie order among equidistant keys is unspecified;
    # we use "smaller key index first" (stable sort).  This only permutes the
    # columns of the returned attention map, never the output features.
    order = np.argsort(dist, axis=1, kind="stable")[:, :topk]
    coord = np.take_along_axis(rel, order, axis=1).astype(np.float32)
    return order, coord, topk


# ----------------------------------------------------------------------------
# Fused Pallas kernel.  Grid = (batch, window).
#   w == 0      : full-width q / k / v projections into VMEM scratch
#   every w     : contiguous topK key slice -> per-head scores -> softmax ->
#                 context -> single C-deep output projection
# ----------------------------------------------------------------------------
def _window_attn_kernel(starts_ref,                     # SMEM scalar prefetch
                        q_ref, x_ref,
                        wq_ref, bq_ref, wk_ref, bk_ref, wv_ref, bv_ref,
                        wp_ref, bp_ref,
                        out_ref, attn_ref,
                        q_sc, k_sc, v_sc,
                        *, wsq, topk, num_heads, scale):
    w = pl.program_id(1)

    # Hoisted, full-width projections (once per batch step).
    @pl.when(w == 0)
    def _():
        xq = q_ref[0].astype(jnp.float32)               # (Lq, C)
        xk = x_ref[0].astype(jnp.float32)               # (Lk, C)
        q_sc[...] = (jnp.dot(xq, wq_ref[...], preferred_element_type=jnp.float32)
                     + bq_ref[...]) * scale
        k_sc[...] = (jnp.dot(xk, wk_ref[...], preferred_element_type=jnp.float32)
                     + bk_ref[...])
        v_sc[...] = (jnp.dot(xk, wv_ref[...], preferred_element_type=jnp.float32)
                     + bv_ref[...])

    C = q_sc.shape[-1]
    hd = C // num_heads

    # Per-window slices: queries are contiguous rows; nearest-topK keys of a
    # 1-D window are also a contiguous row range (start offset from SMEM).
    q_start = pl.multiple_of(w * wsq, wsq)
    k_start = starts_ref[w]
    q2 = q_sc[pl.ds(q_start, wsq), :]                   # (wsq, C)
    k2 = k_sc[pl.ds(k_start, topk), :]                  # (topK, C)
    v2 = v_sc[pl.ds(k_start, topk), :]                  # (topK, C)

    ctx_heads = []
    for h in range(num_heads):                          # static, unrolled
        lo = h * hd
        qh = q2[:, lo:lo + hd]                          # (wsq, hd)
        kh = k2[:, lo:lo + hd]                          # (topK, hd)
        vh = v2[:, lo:lo + hd]                          # (topK, hd)

        s = lax.dot_general(qh, kh, (((1,), (1,)), ((), ())),
                            preferred_element_type=jnp.float32)   # (wsq, topK)
        s = s - jnp.max(s, axis=-1, keepdims=True)
        e = jnp.exp(s)
        p = e / jnp.sum(e, axis=-1, keepdims=True)      # exact normalisation

        attn_ref[0, 0, h] = p.astype(attn_ref.dtype)    # block-diag attn tile

        ctx_heads.append(jnp.dot(p, vh, preferred_element_type=jnp.float32))

    ctx = jnp.concatenate(ctx_heads, axis=-1)           # (wsq, C), head-major
    out_ref[0, 0] = (jnp.dot(ctx, wp_ref[...], preferred_element_type=jnp.float32)
                     + bp_ref[...]).astype(out_ref.dtype)


# ----------------------------------------------------------------------------
# Wrapper (forward pass of WindowAttention, eval mode, single focal level)
# ----------------------------------------------------------------------------
def window_attention_forward(query, key, params, *,
                             window_size, window_size_query, num_heads,
                             key_padding_mask=None):
    # TODO(synk): only a single focal level (len(key)==1) and no
    # key_padding_mask are supported; the masked / multi-level concat path of
    # the reference module is not implemented.
    assert len(key) == 1 and key_padding_mask is None

    x = key[0]
    B, Lk, C = x.shape
    _, Lq, _ = query.shape
    hd = C // num_heads
    nW = Lq // window_size_query
    scale = hd ** (-0.5)

    idx, _, topK = _get_topk_closest_indice(nW, Lk, window_size)   # (nW, topK)

    # For a 1-D distance metric the topK nearest keys form a contiguous range.
    starts = idx.min(axis=1).astype(np.int32)                      # (nW,)
    assert np.all(np.sort(idx, axis=1)
                  == starts[:, None] + np.arange(topK)[None, :]), \
        "nearest-topK indices are expected to be a contiguous range per window"
    # Static permutation: reference column t  <-  kernel (contiguous) column.
    perm = (idx - starts[:, None]).astype(np.int32)                # (nW, topK)

    # Weight layout plumbing (host side, free).
    wq_t = params["wq"].T                      # (C, C)
    bq = params["bq"].reshape(1, C)
    wkv_t = params["wkv"].T                    # (C, 2C)
    wk_t = wkv_t[:, :C]
    wv_t = wkv_t[:, C:]
    bk = params["bkv"][:C].reshape(1, C)
    bv = params["bkv"][C:].reshape(1, C)
    wp_t = params["wp"].T                      # (C, C)
    bp = params["bp"].reshape(1, C)

    starts_arr = jnp.asarray(starts)

    # Resident weights: constant index maps -> DMA'd once for the whole grid.
    w_spec = pl.BlockSpec((C, C), lambda b, w, st: (0, 0))
    b_spec = pl.BlockSpec((1, C), lambda b, w, st: (0, 0))

    grid_spec = pltpu.PrefetchScalarGridSpec(
        num_scalar_prefetch=1,
        grid=(B, nW),
        in_specs=[
            pl.BlockSpec((1, Lq, C), lambda b, w, st: (b, 0, 0)),   # query
            pl.BlockSpec((1, Lk, C), lambda b, w, st: (b, 0, 0)),   # keys
            w_spec, b_spec,                                         # wq, bq
            w_spec, b_spec,                                         # wk, bk
            w_spec, b_spec,                                         # wv, bv
            w_spec, b_spec,                                         # wp, bp
        ],
        out_specs=(
            pl.BlockSpec((1, 1, window_size_query, C),
                         lambda b, w, st: (b, w, 0, 0)),
            pl.BlockSpec((1, 1, num_heads, window_size_query, topK),
                         lambda b, w, st: (b, w, 0, 0, 0)),
        ),
        scratch_shapes=[
            pltpu.VMEM((Lq, C), jnp.float32),     # projected q (scaled)
            pltpu.VMEM((Lk, C), jnp.float32),     # projected k
            pltpu.VMEM((Lk, C), jnp.float32),     # projected v
        ],
    )

    out4, attn5 = pl.pallas_call(
        functools.partial(_window_attn_kernel, wsq=window_size_query,
                          topk=topK, num_heads=num_heads, scale=scale),
        grid_spec=grid_spec,
        out_shape=(jax.ShapeDtypeStruct((B, nW, window_size_query, C), query.dtype),
                   jax.ShapeDtypeStruct((B, nW, num_heads, window_size_query, topK),
                                        jnp.float32)),
        compiler_params=pltpu.CompilerParams(
            # TODO(synk): when B == 1 on v7x, shard windows across the two
            # TensorCores instead (requires per-core projection recompute).
            dimension_semantics=("parallel", "arbitrary")),
    )(starts_arr, query, x, wq_t, bq, wk_t, bk, wv_t, bv, wp_t, bp)

    # (B, nW, wsq, C) -> (B*nW, wsq, C): identical to window_partition layout.
    x_out = out4.reshape(B * nW, window_size_query, C)

    # Reorder attn columns from contiguous-key order to the reference
    # (distance-sorted topk) order with a static per-window permutation.
    perm_b = jnp.broadcast_to(jnp.asarray(perm)[None, :, None, None, :],
                              attn5.shape)
    attn = jnp.take_along_axis(attn5, perm_b, axis=-1)
    attn = attn.reshape(B * nW, num_heads, window_size_query, topK)
    return x_out, attn


# ----------------------------------------------------------------------------
# Pure-JAX reference (mirrors the PyTorch forward) and parameters
# ----------------------------------------------------------------------------
def reference_forward(query, key, params, *, window_size, window_size_query, num_heads):
    x = key[0]
    B, Lk, C = x.shape
    _, Lq, _ = query.shape
    hd = C // num_heads
    nW = Lq // window_size_query
    scale = hd ** (-0.5)

    q = query @ params["wq"].T + params["bq"]
    qw = q.reshape(B * nW, window_size_query, num_heads, hd).transpose(0, 2, 1, 3) * scale
    kv = (x @ params["wkv"].T + params["bkv"]).reshape(B, Lk, 2, num_heads, hd)
    k, v = kv[:, :, 0], kv[:, :, 1]
    idx, _, topK = _get_topk_closest_indice(nW, Lk, window_size)
    idx = jnp.asarray(idx)
    k_sel = jnp.transpose(k[:, idx], (0, 1, 3, 2, 4)).reshape(B * nW, num_heads, topK, hd)
    v_sel = jnp.transpose(v[:, idx], (0, 1, 3, 2, 4)).reshape(B * nW, num_heads, topK, hd)
    attn = jax.nn.softmax(qw @ jnp.swapaxes(k_sel, -1, -2), axis=-1)
    out = (attn @ v_sel).transpose(0, 2, 1, 3).reshape(B * nW, window_size_query, C)
    out = out @ params["wp"].T + params["bp"]
    return out, attn


def init_params(rng, dim):
    ks = jax.random.split(rng, 6)
    s = 0.05
    return {
        "wq": jax.random.normal(ks[0], (dim, dim), jnp.float32) * s,
        "bq": jax.random.normal(ks[1], (dim,), jnp.float32) * s,
        "wkv": jax.random.normal(ks[2], (2 * dim, dim), jnp.float32) * s,
        "bkv": jax.random.normal(ks[3], (2 * dim,), jnp.float32) * s,
        "wp": jax.random.normal(ks[4], (dim, dim), jnp.float32) * s,
        "bp": jax.random.normal(ks[5], (dim,), jnp.float32) * s,
    }


if __name__ == "__main__":
    dim = 32
    num_heads = 4
    window_size = 8          # topK nearest keys per query window
    window_size_query = 4
    len_q, len_k = 16, 16
    B = 2
    nW = len_q // window_size_query

    root = jax.random.PRNGKey(0)
    kp, kq, kk = jax.random.split(root, 3)
    params = init_params(kp, dim)
    query = jax.random.normal(kq, (B, len_q, dim), jnp.float32)
    keys = [jax.random.normal(kk, (B, len_k, dim), jnp.float32)]

    fwd = jax.jit(functools.partial(
        window_attention_forward, window_size=window_size,
        window_size_query=window_size_query, num_heads=num_heads))
    x_out, attn = fwd(query, keys, params)
    x_out = jax.block_until_ready(x_out)
    attn = jax.block_until_ready(attn)

    assert x_out.shape == (B * nW, window_size_query, dim)
    assert attn.shape == (B * nW, num_heads, window_size_query, window_size)
    assert bool(jnp.all(jnp.isfinite(x_out))) and bool(jnp.all(jnp.isfinite(attn)))

    x_ref, attn_ref = reference_forward(
        query, keys, params, window_size=window_size,
        window_size_query=window_size_query, num_heads=num_heads)
    assert float(jnp.max(jnp.abs(x_out - x_ref))) < 1e-2
    assert float(jnp.max(jnp.abs(attn - attn_ref))) < 1e-2

    print("KERNEL_OK")
</pallas_src>

<mosaic_0001>
module attributes {stable_mosaic.version = 11 : i64} {
  func.func @_window_attn_kernel(%arg0: i32, %arg1: i32, %arg2: memref<4xi32, #tpu.memory_space<smem>>, %arg3: memref<1x16x32xf32, #tpu.memory_space<vmem>>, %arg4: memref<1x16x32xf32, #tpu.memory_space<vmem>>, %arg5: memref<32x32xf32, #tpu.memory_space<vmem>>, %arg6: memref<1x32xf32, #tpu.memory_space<vmem>>, %arg7: memref<32x32xf32, #tpu.memory_space<vmem>>, %arg8: memref<1x32xf32, #tpu.memory_space<vmem>>, %arg9: memref<32x32xf32, #tpu.memory_space<vmem>>, %arg10: memref<1x32xf32, #tpu.memory_space<vmem>>, %arg11: memref<32x32xf32, #tpu.memory_space<vmem>>, %arg12: memref<1x32xf32, #tpu.memory_space<vmem>>, %arg13: memref<1x1x4x32xf32, #tpu.memory_space<vmem>>, %arg14: memref<1x1x4x4x8xf32, #tpu.memory_space<vmem>>, %arg15: memref<16x32xf32, #tpu.memory_space<vmem>>, %arg16: memref<16x32xf32, #tpu.memory_space<vmem>>, %arg17: memref<16x32xf32, #tpu.memory_space<vmem>>) attributes {dimension_semantics = [#tpu.dimension_semantics<parallel>, #tpu.dimension_semantics<arbitrary>], iteration_bounds = array<i64: 2, 4>, scalar_prefetch = 1 : i64, scratch_operands = 3 : i64, tpu.core_type = #tpu.core_type<tc>, window_params = [{transform_indices = @transform_0, window_bounds = array<i64: 1, 16, 32>}, {transform_indices = @transform_1, window_bounds = array<i64: 1, 16, 32>}, {pipeline_mode = #tpu.pipeline_mode<synchronous>, transform_indices = @transform_2, window_bounds = array<i64: 32, 32>}, {pipeline_mode = #tpu.pipeline_mode<synchronous>, transform_indices = @transform_3, window_bounds = array<i64: 1, 32>}, {pipeline_mode = #tpu.pipeline_mode<synchronous>, transform_indices = @transform_4, window_bounds = array<i64: 32, 32>}, {pipeline_mode = #tpu.pipeline_mode<synchronous>, transform_indices = @transform_5, window_bounds = array<i64: 1, 32>}, {pipeline_mode = #tpu.pipeline_mode<synchronous>, transform_indices = @transform_6, window_bounds = array<i64: 32, 32>}, {pipeline_mode = #tpu.pipeline_mode<synchronous>, transform_indices = @transform_7, window_bounds = array<i64: 1, 32>}, {pipeline_mode = #tpu.pipeline_mode<synchronous>, transform_indices = @transform_8, window_bounds = array<i64: 32, 32>}, {pipeline_mode = #tpu.pipeline_mode<synchronous>, transform_indices = @transform_9, window_bounds = array<i64: 1, 32>}, {transform_indices = @transform_10, window_bounds = array<i64: 1, 1, 4, 32>}, {transform_indices = @transform_11, window_bounds = array<i64: 1, 1, 4, 4, 8>}]} {
    %c0_i32 = arith.constant 0 : i32
    %0 = arith.cmpi eq, %arg1, %c0_i32 : i32
    %1 = arith.extui %0 : i1 to i32
    %c0_i32_0 = arith.constant 0 : i32
    %2 = arith.cmpi ne, %1, %c0_i32_0 : i32
    scf.if %2 {
      %c0_44 = arith.constant 0 : index
      %c0_45 = arith.constant 0 : index
      %c0_46 = arith.constant 0 : index
      %90 = vector.load %arg3[%c0_44, %c0_45, %c0_46] : memref<1x16x32xf32, #tpu.memory_space<vmem>>, vector<1x16x32xf32>
      %91 = vector.shape_cast %90 : vector<1x16x32xf32> to vector<16x32xf32>
      %c0_47 = arith.constant 0 : index
      %c0_48 = arith.constant 0 : index
      %c0_49 = arith.constant 0 : index
      %92 = vector.load %arg4[%c0_47, %c0_48, %c0_49] : memref<1x16x32xf32, #tpu.memory_space<vmem>>, vector<1x16x32xf32>
      %93 = vector.shape_cast %92 : vector<1x16x32xf32> to vector<16x32xf32>
      %c0_50 = arith.constant 0 : index
      %c0_51 = arith.constant 0 : index
      %94 = vector.load %arg5[%c0_50, %c0_51] : memref<32x32xf32, #tpu.memory_space<vmem>>, vector<32x32xf32>
      %cst_52 = arith.constant dense<0.000000e+00> : vector<16x32xf32>
      %95 = tpu.matmul %91, %94, %cst_52 {dimension_numbers = #tpu.dot_dimension_numbers<[1], [0], [0], [1], [0, 0, 1, 1], [], []>} : vector<16x32xf32>, vector<32x32xf32>, vector<16x32xf32> -> vector<16x32xf32>
      %c0_53 = arith.constant 0 : index
      %c0_54 = arith.constant 0 : index
      %96 = vector.load %arg6[%c0_53, %c0_54] : memref<1x32xf32, #tpu.memory_space<vmem>>, vector<1x32xf32>
      %97 = vector.broadcast %96 : vector<1x32xf32> to vector<16x32xf32>
      %98 = arith.addf %95, %97 : vector<16x32xf32>
      %cst_55 = arith.constant 0.353553385 : f32
      %99 = vector.broadcast %cst_55 : f32 to vector<16x32xf32>
      %100 = arith.mulf %98, %99 : vector<16x32xf32>
      %c0_56 = arith.constant 0 : index
      %c0_57 = arith.constant 0 : index
      %101 = vector.load %arg15[%c0_56, %c0_57] : memref<16x32xf32, #tpu.memory_space<vmem>>, vector<16x32xf32>
      tpu.vector_store %arg15[%c0_56, %c0_57], %100 {strides = array<i32>} : memref<16x32xf32, #tpu.memory_space<vmem>>, vector<16x32xf32>,
      %c0_58 = arith.constant 0 : index
      %c0_59 = arith.constant 0 : index
      %102 = vector.load %arg7[%c0_58, %c0_59] : memref<32x32xf32, #tpu.memory_space<vmem>>, vector<32x32xf32>
      %cst_60 = arith.constant dense<0.000000e+00> : vector<16x32xf32>
      %103 = tpu.matmul %93, %102, %cst_60 {dimension_numbers = #tpu.dot_dimension_numbers<[1], [0], [0], [1], [0, 0, 1, 1], [], []>} : vector<16x32xf32>, vector<32x32xf32>, vector<16x32xf32> -> vector<16x32xf32>
      %c0_61 = arith.constant 0 : index
      %c0_62 = arith.constant 0 : index
      %104 = vector.load %arg8[%c0_61, %c0_62] : memref<1x32xf32, #tpu.memory_space<vmem>>, vector<1x32xf32>
      %105 = vector.broadcast %104 : vector<1x32xf32> to vector<16x32xf32>
      %106 = arith.addf %103, %105 : vector<16x32xf32>
      %c0_63 = arith.constant 0 : index
      %c0_64 = arith.constant 0 : index
      %107 = vector.load %arg16[%c0_63, %c0_64] : memref<16x32xf32, #tpu.memory_space<vmem>>, vector<16x32xf32>
      tpu.vector_store %arg16[%c0_63, %c0_64], %106 {strides = array<i32>} : memref<16x32xf32, #tpu.memory_space<vmem>>, vector<16x32xf32>,
      %c0_65 = arith.constant 0 : index
      %c0_66 = arith.constant 0 : index
      %108 = vector.load %arg9[%c0_65, %c0_66] : memref<32x32xf32, #tpu.memory_space<vmem>>, vector<32x32xf32>
      %cst_67 = arith.constant dense<0.000000e+00> : vector<16x32xf32>
      %109 = tpu.matmul %93, %108, %cst_67 {dimension_numbers = #tpu.dot_dimension_numbers<[1], [0], [0], [1], [0, 0, 1, 1], [], []>} : vector<16x32xf32>, vector<32x32xf32>, vector<16x32xf32> -> vector<16x32xf32>
      %c0_68 = arith.constant 0 : index
      %c0_69 = arith.constant 0 : index
      %110 = vector.load %arg10[%c0_68, %c0_69] : memref<1x32xf32, #tpu.memory_space<vmem>>, vector<1x32xf32>
      %111 = vector.broadcast %110 : vector<1x32xf32> to vector<16x32xf32>
      %112 = arith.addf %109, %111 : vector<16x32xf32>
      %c0_70 = arith.constant 0 : index
      %c0_71 = arith.constant 0 : index
      %113 = vector.load %arg17[%c0_70, %c0_71] : memref<16x32xf32, #tpu.memory_space<vmem>>, vector<16x32xf32>
      tpu.vector_store %arg17[%c0_70, %c0_71], %112 {strides = array<i32>} : memref<16x32xf32, #tpu.memory_space<vmem>>, vector<16x32xf32>,
    } else {
    }
    %c4_i32 = arith.constant 4 : i32
    %3 = arith.muli %arg1, %c4_i32 : i32
    %4 = tpu.assume_multiple %3, 4 : i32
    %5 = arith.index_cast %arg1 : i32 to index
    %6 = memref.load %arg2[%5] : memref<4xi32, #tpu.memory_space<smem>>
    %7 = arith.index_cast %4 : i32 to index
    %c0 = arith.constant 0 : index
    %8 = vector.load %arg15[%7, %c0] : memref<16x32xf32, #tpu.memory_space<vmem>>, vector<4x32xf32>
    %9 = arith.index_cast %6 : i32 to index
    %c0_1 = arith.constant 0 : index
    %10 = vector.load %arg16[%9, %c0_1] : memref<16x32xf32, #tpu.memory_space<vmem>>, vector<8x32xf32>
    %11 = arith.index_cast %6 : i32 to index
    %c0_2 = arith.constant 0 : index
    %12 = vector.load %arg17[%11, %c0_2] : memref<16x32xf32, #tpu.memory_space<vmem>>, vector<8x32xf32>
    %13 = vector.extract_strided_slice %8 {offsets = [0, 0], sizes = [4, 8], strides = [1, 1]} : vector<4x32xf32> to vector<4x8xf32>
    %14 = vector.extract_strided_slice %10 {offsets = [0, 0], sizes = [8, 8], strides = [1, 1]} : vector<8x32xf32> to vector<8x8xf32>
    %15 = vector.extract_strided_slice %12 {offsets = [0, 0], sizes = [8, 8], strides = [1, 1]} : vector<8x32xf32> to vector<8x8xf32>
    %cst = arith.constant dense<0.000000e+00> : vector<4x8xf32>
    %16 = tpu.matmul %13, %14, %cst {dimension_numbers = #tpu.dot_dimension_numbers<[1], [1], [0], [0], [0, 0, 1, 0], [], []>} : vector<4x8xf32>, vector<8x8xf32>, vector<4x8xf32> -> vector<4x8xf32>
    %cst_3 = arith.constant dense<0xFF800000> : vector<4xf32>
    %17 = vector.multi_reduction <maximumf>, %16, %cst_3 [1] : vector<4x8xf32> to vector<4xf32>
    %18 = vector.shape_cast %17 : vector<4xf32> to vector<4x1xf32>
    %19 = vector.broadcast %18 : vector<4x1xf32> to vector<4x8xf32>
    %20 = arith.subf %16, %19 : vector<4x8xf32>
    %21 = math.exp %20 : vector<4x8xf32>
    %cst_4 = arith.constant dense<0.000000e+00> : vector<4xf32>
    %22 = vector.multi_reduction <add>, %21, %cst_4 [1] : vector<4x8xf32> to vector<4xf32>
    %23 = vector.shape_cast %22 : vector<4xf32> to vector<4x1xf32>
    %24 = vector.broadcast %23 : vector<4x1xf32> to vector<4x8xf32>
    %25 = arith.divf %21, %24 : vector<4x8xf32>
    %c0_5 = arith.constant 0 : index
    %c0_6 = arith.constant 0 : index
    %c0_7 = arith.constant 0 : index
    %c0_8 = arith.constant 0 : index
    %c0_9 = arith.constant 0 : index
    %26 = vector.load %arg14[%c0_5, %c0_6, %c0_7, %c0_8, %c0_9] : memref<1x1x4x4x8xf32, #tpu.memory_space<vmem>>, vector<1x1x1x4x8xf32>
    %27 = vector.shape_cast %26 : vector<1x1x1x4x8xf32> to vector<4x8xf32>
    %28 = vector.shape_cast %25 : vector<4x8xf32> to vector<1x1x1x4x8xf32>
    tpu.vector_store %arg14[%c0_5, %c0_6, %c0_7, %c0_8, %c0_9], %28 {strides = array<i32>} : memref<1x1x4x4x8xf32, #tpu.memory_space<vmem>>, vector<1x1x1x4x8xf32>,
    %cst_10 = arith.constant dense<0.000000e+00> : vector<4x8xf32>
    %29 = tpu.matmul %25, %15, %cst_10 {dimension_numbers = #tpu.dot_dimension_numbers<[1], [0], [0], [1], [0, 0, 1, 1], [], []>} : vector<4x8xf32>, vector<8x8xf32>, vector<4x8xf32> -> vector<4x8xf32>
    %30 = vector.extract_strided_slice %8 {offsets = [0, 8], sizes = [4, 8], strides = [1, 1]} : vector<4x32xf32> to vector<4x8xf32>
    %31 = vector.extract_strided_slice %10 {offsets = [0, 8], sizes = [8, 8], strides = [1, 1]} : vector<8x32xf32> to vector<8x8xf32>
    %32 = vector.extract_strided_slice %12 {offsets = [0, 8], sizes = [8, 8], strides = [1, 1]} : vector<8x32xf32> to vector<8x8xf32>
    %cst_11 = arith.constant dense<0.000000e+00> : vector<4x8xf32>
    %33 = tpu.matmul %30, %31, %cst_11 {dimension_numbers = #tpu.dot_dimension_numbers<[1], [1], [0], [0], [0, 0, 1, 0], [], []>} : vector<4x8xf32>, vector<8x8xf32>, vector<4x8xf32> -> vector<4x8xf32>
    %cst_12 = arith.constant dense<0xFF800000> : vector<4xf32>
    %34 = vector.multi_reduction <maximumf>, %33, %cst_12 [1] : vector<4x8xf32> to vector<4xf32>
    %35 = vector.shape_cast %34 : vector<4xf32> to vector<4x1xf32>
    %36 = vector.broadcast %35 : vector<4x1xf32> to vector<4x8xf32>
    %37 = arith.subf %33, %36 : vector<4x8xf32>
    %38 = math.exp %37 : vector<4x8xf32>
    %cst_13 = arith.constant dense<0.000000e+00> : vector<4xf32>
    %39 = vector.multi_reduction <add>, %38, %cst_13 [1] : vector<4x8xf32> to vector<4xf32>
    %40 = vector.shape_cast %39 : vector<4xf32> to vector<4x1xf32>
    %41 = vector.broadcast %40 : vector<4x1xf32> to vector<4x8xf32>
    %42 = arith.divf %38, %41 : vector<4x8xf32>
    %c0_14 = arith.constant 0 : index
    %c0_15 = arith.constant 0 : index
    %c1 = arith.constant 1 : index
    %c0_16 = arith.constant 0 : index
    %c0_17 = arith.constant 0 : index
    %43 = vector.load %arg14[%c0_14, %c0_15, %c1, %c0_16, %c0_17] : memref<1x1x4x4x8xf32, #tpu.memory_space<vmem>>, vector<1x1x1x4x8xf32>
    %44 = vector.shape_cast %43 : vector<1x1x1x4x8xf32> to vector<4x8xf32>
    %45 = vector.shape_cast %42 : vector<4x8xf32> to vector<1x1x1x4x8xf32>
    tpu.vector_store %arg14[%c0_14, %c0_15, %c1, %c0_16, %c0_17], %45 {strides = array<i32>} : memref<1x1x4x4x8xf32, #tpu.memory_space<vmem>>, vector<1x1x1x4x8xf32>,
    %cst_18 = arith.constant dense<0.000000e+00> : vector<4x8xf32>
    %46 = tpu.matmul %42, %32, %cst_18 {dimension_numbers = #tpu.dot_dimension_numbers<[1], [0], [0], [1], [0, 0, 1, 1], [], []>} : vector<4x8xf32>, vector<8x8xf32>, vector<4x8xf32> -> vector<4x8xf32>
    %47 = vector.extract_strided_slice %8 {offsets = [0, 16], sizes = [4, 8], strides = [1, 1]} : vector<4x32xf32> to vector<4x8xf32>
    %48 = vector.extract_strided_slice %10 {offsets = [0, 16], sizes = [8, 8], strides = [1, 1]} : vector<8x32xf32> to vector<8x8xf32>
    %49 = vector.extract_strided_slice %12 {offsets = [0, 16], sizes = [8, 8], strides = [1, 1]} : vector<8x32xf32> to vector<8x8xf32>
    %cst_19 = arith.constant dense<0.000000e+00> : vector<4x8xf32>
    %50 = tpu.matmul %47, %48, %cst_19 {dimension_numbers = #tpu.dot_dimension_numbers<[1], [1], [0], [0], [0, 0, 1, 0], [], []>} : vector<4x8xf32>, vector<8x8xf32>, vector<4x8xf32> -> vector<4x8xf32>
    %cst_20 = arith.constant dense<0xFF800000> : vector<4xf32>
    %51 = vector.multi_reduction <maximumf>, %50, %cst_20 [1] : vector<4x8xf32> to vector<4xf32>
    %52 = vector.shape_cast %51 : vector<4xf32> to vector<4x1xf32>
    %53 = vector.broadcast %52 : vector<4x1xf32> to vector<4x8xf32>
    %54 = arith.subf %50, %53 : vector<4x8xf32>
    %55 = math.exp %54 : vector<4x8xf32>
    %cst_21 = arith.constant dense<0.000000e+00> : vector<4xf32>
    %56 = vector.multi_reduction <add>, %55, %cst_21 [1] : vector<4x8xf32> to vector<4xf32>
    %57 = vector.shape_cast %56 : vector<4xf32> to vector<4x1xf32>
    %58 = vector.broadcast %57 : vector<4x1xf32> to vector<4x8xf32>
    %59 = arith.divf %55, %58 : vector<4x8xf32>
    %c0_22 = arith.constant 0 : index
    %c0_23 = arith.constant 0 : index
    %c2 = arith.constant 2 : index
    %c0_24 = arith.constant 0 : index
    %c0_25 = arith.constant 0 : index
    %60 = vector.load %arg14[%c0_22, %c0_23, %c2, %c0_24, %c0_25] : memref<1x1x4x4x8xf32, #tpu.memory_space<vmem>>, vector<1x1x1x4x8xf32>
    %61 = vector.shape_cast %60 : vector<1x1x1x4x8xf32> to vector<4x8xf32>
    %62 = vector.shape_cast %59 : vector<4x8xf32> to vector<1x1x1x4x8xf32>
    tpu.vector_store %arg14[%c0_22, %c0_23, %c2, %c0_24, %c0_25], %62 {strides = array<i32>} : memref<1x1x4x4x8xf32, #tpu.memory_space<vmem>>, vector<1x1x1x4x8xf32>,
    %cst_26 = arith.constant dense<0.000000e+00> : vector<4x8xf32>
    %63 = tpu.matmul %59, %49, %cst_26 {dimension_numbers = #tpu.dot_dimension_numbers<[1], [0], [0], [1], [0, 0, 1, 1], [], []>} : vector<4x8xf32>, vector<8x8xf32>, vector<4x8xf32> -> vector<4x8xf32>
    %64 = vector.extract_strided_slice %8 {offsets = [0, 24], sizes = [4, 8], strides = [1, 1]} : vector<4x32xf32> to vector<4x8xf32>
    %65 = vector.extract_strided_slice %10 {offsets = [0, 24], sizes = [8, 8], strides = [1, 1]} : vector<8x32xf32> to vector<8x8xf32>
    %66 = vector.extract_strided_slice %12 {offsets = [0, 24], sizes = [8, 8], strides = [1, 1]} : vector<8x32xf32> to vector<8x8xf32>
    %cst_27 = arith.constant dense<0.000000e+00> : vector<4x8xf32>
    %67 = tpu.matmul %64, %65, %cst_27 {dimension_numbers = #tpu.dot_dimension_numbers<[1], [1], [0], [0], [0, 0, 1, 0], [], []>} : vector<4x8xf32>, vector<8x8xf32>, vector<4x8xf32> -> vector<4x8xf32>
    %cst_28 = arith.constant dense<0xFF800000> : vector<4xf32>
    %68 = vector.multi_reduction <maximumf>, %67, %cst_28 [1] : vector<4x8xf32> to vector<4xf32>
    %69 = vector.shape_cast %68 : vector<4xf32> to vector<4x1xf32>
    %70 = vector.broadcast %69 : vector<4x1xf32> to vector<4x8xf32>
    %71 = arith.subf %67, %70 : vector<4x8xf32>
    %72 = math.exp %71 : vector<4x8xf32>
    %cst_29 = arith.constant dense<0.000000e+00> : vector<4xf32>
    %73 = vector.multi_reduction <add>, %72, %cst_29 [1] : vector<4x8xf32> to vector<4xf32>
    %74 = vector.shape_cast %73 : vector<4xf32> to vector<4x1xf32>
    %75 = vector.broadcast %74 : vector<4x1xf32> to vector<4x8xf32>
    %76 = arith.divf %72, %75 : vector<4x8xf32>
    %c0_30 = arith.constant 0 : index
    %c0_31 = arith.constant 0 : index
    %c3 = arith.constant 3 : index
    %c0_32 = arith.constant 0 : index
    %c0_33 = arith.constant 0 : index
    %77 = vector.load %arg14[%c0_30, %c0_31, %c3, %c0_32, %c0_33] : memref<1x1x4x4x8xf32, #tpu.memory_space<vmem>>, vector<1x1x1x4x8xf32>
    %78 = vector.shape_cast %77 : vector<1x1x1x4x8xf32> to vector<4x8xf32>
    %79 = vector.shape_cast %76 : vector<4x8xf32> to vector<1x1x1x4x8xf32>
    tpu.vector_store %arg14[%c0_30, %c0_31, %c3, %c0_32, %c0_33], %79 {strides = array<i32>} : memref<1x1x4x4x8xf32, #tpu.memory_space<vmem>>, vector<1x1x1x4x8xf32>,
    %cst_34 = arith.constant dense<0.000000e+00> : vector<4x8xf32>
    %80 = tpu.matmul %76, %66, %cst_34 {dimension_numbers = #tpu.dot_dimension_numbers<[1], [0], [0], [1], [0, 0, 1, 1], [], []>} : vector<4x8xf32>, vector<8x8xf32>, vector<4x8xf32> -> vector<4x8xf32>
    %81 = tpu.concatenate %29, %46, %63, %80 in 1 : vector<4x8xf32>, vector<4x8xf32>, vector<4x8xf32>, vector<4x8xf32> -> vector<4x32xf32>
    %c0_35 = arith.constant 0 : index
    %c0_36 = arith.constant 0 : index
    %82 = vector.load %arg11[%c0_35, %c0_36] : memref<32x32xf32, #tpu.memory_space<vmem>>, vector<32x32xf32>
    %cst_37 = arith.constant dense<0.000000e+00> : vector<4x32xf32>
    %83 = tpu.matmul %81, %82, %cst_37 {dimension_numbers = #tpu.dot_dimension_numbers<[1], [0], [0], [1], [0, 0, 1, 1], [], []>} : vector<4x32xf32>, vector<32x32xf32>, vector<4x32xf32> -> vector<4x32xf32>
    %c0_38 = arith.constant 0 : index
    %c0_39 = arith.constant 0 : index
    %84 = vector.load %arg12[%c0_38, %c0_39] : memref<1x32xf32, #tpu.memory_space<vmem>>, vector<1x32xf32>
    %85 = vector.broadcast %84 : vector<1x32xf32> to vector<4x32xf32>
    %86 = arith.addf %83, %85 : vector<4x32xf32>
    %c0_40 = arith.constant 0 : index
    %c0_41 = arith.constant 0 : index
    %c0_42 = arith.constant 0 : index
    %c0_43 = arith.constant 0 : index
    %87 = vector.load %arg13[%c0_40, %c0_41, %c0_42, %c0_43] : memref<1x1x4x32xf32, #tpu.memory_space<vmem>>, vector<1x1x4x32xf32>
    %88 = vector.shape_cast %87 : vector<1x1x4x32xf32> to vector<4x32xf32>
    %89 = vector.shape_cast %86 : vector<4x32xf32> to vector<1x1x4x32xf32>
    tpu.vector_store %arg13[%c0_40, %c0_41, %c0_42, %c0_43], %89 {strides = array<i32>} : memref<1x1x4x32xf32, #tpu.memory_space<vmem>>, vector<1x1x4x32xf32>,
    return
  }
  func.func @transform_0(%arg0: i32, %arg1: i32, %arg2: memref<4xi32, #tpu.memory_space<smem>>) -> (i32, i32, i32) {
    %c0_i32 = arith.constant 0 : i32
    %c0_i32_0 = arith.constant 0 : i32
    %c0_i32_1 = arith.constant 0 : i32
    return %arg0, %c0_i32, %c0_i32_0 : i32, i32, i32
  }
  func.func @transform_1(%arg0: i32, %arg1: i32, %arg2: memref<4xi32, #tpu.memory_space<smem>>) -> (i32, i32, i32) {
    %c0_i32 = arith.constant 0 : i32
    %c0_i32_0 = arith.constant 0 : i32
    %c0_i32_1 = arith.constant 0 : i32
    return %arg0, %c0_i32, %c0_i32_0 : i32, i32, i32
  }
  func.func @transform_2(%arg0: i32, %arg1: i32, %arg2: memref<4xi32, #tpu.memory_space<smem>>) -> (i32, i32) {
    %c0_i32 = arith.constant 0 : i32
    %c0_i32_0 = arith.constant 0 : i32
    %c0_i32_1 = arith.constant 0 : i32
    return %c0_i32, %c0_i32_0 : i32, i32
  }
  func.func @transform_3(%arg0: i32, %arg1: i32, %arg2: memref<4xi32, #tpu.memory_space<smem>>) -> (i32, i32) {
    %c0_i32 = arith.constant 0 : i32
    %c0_i32_0 = arith.constant 0 : i32
    %c0_i32_1 = arith.constant 0 : i32
    return %c0_i32, %c0_i32_0 : i32, i32
  }
  func.func @transform_4(%arg0: i32, %arg1: i32, %arg2: memref<4xi32, #tpu.memory_space<smem>>) -> (i32, i32) {
    %c0_i32 = arith.constant 0 : i32
    %c0_i32_0 = arith.constant 0 : i32
    %c0_i32_1 = arith.constant 0 : i32
    return %c0_i32, %c0_i32_0 : i32, i32
  }
  func.func @transform_5(%arg0: i32, %arg1: i32, %arg2: memref<4xi32, #tpu.memory_space<smem>>) -> (i32, i32) {
    %c0_i32 = arith.constant 0 : i32
    %c0_i32_0 = arith.constant 0 : i32
    %c0_i32_1 = arith.constant 0 : i32
    return %c0_i32, %c0_i32_0 : i32, i32
  }
  func.func @transform_6(%arg0: i32, %arg1: i32, %arg2: memref<4xi32, #tpu.memory_space<smem>>) -> (i32, i32) {
    %c0_i32 = arith.constant 0 : i32
    %c0_i32_0 = arith.constant 0 : i32
    %c0_i32_1 = arith.constant 0 : i32
    return %c0_i32, %c0_i32_0 : i32, i32
  }
  func.func @transform_7(%arg0: i32, %arg1: i32, %arg2: memref<4xi32, #tpu.memory_space<smem>>) -> (i32, i32) {
    %c0_i32 = arith.constant 0 : i32
    %c0_i32_0 = arith.constant 0 : i32
    %c0_i32_1 = arith.constant 0 : i32
    return %c0_i32, %c0_i32_0 : i32, i32
  }
  func.func @transform_8(%arg0: i32, %arg1: i32, %arg2: memref<4xi32, #tpu.memory_space<smem>>) -> (i32, i32) {
    %c0_i32 = arith.constant 0 : i32
    %c0_i32_0 = arith.constant 0 : i32
    %c0_i32_1 = arith.constant 0 : i32
    return %c0_i32, %c0_i32_0 : i32, i32
  }
  func.func @transform_9(%arg0: i32, %arg1: i32, %arg2: memref<4xi32, #tpu.memory_space<smem>>) -> (i32, i32) {
    %c0_i32 = arith.constant 0 : i32
    %c0_i32_0 = arith.constant 0 : i32
    %c0_i32_1 = arith.constant 0 : i32
    return %c0_i32, %c0_i32_0 : i32, i32
  }
  func.func @transform_10(%arg0: i32, %arg1: i32, %arg2: memref<4xi32, #tpu.memory_space<smem>>) -> (i32, i32, i32, i32) {
    %c0_i32 = arith.constant 0 : i32
    %c0_i32_0 = arith.constant 0 : i32
    %c0_i32_1 = arith.constant 0 : i32
    return %arg0, %arg1, %c0_i32, %c0_i32_0 : i32, i32, i32, i32
  }
  func.func @transform_11(%arg0: i32, %arg1: i32, %arg2: memref<4xi32, #tpu.memory_space<smem>>) -> (i32, i32, i32, i32, i32) {
    %c0_i32 = arith.constant 0 : i32
    %c0_i32_0 = arith.constant 0 : i32
    %c0_i32_1 = arith.constant 0 : i32
    %c0_i32_2 = arith.constant 0 : i32
    return %arg0, %arg1, %c0_i32, %c0_i32_0, %c0_i32_1 : i32, i32, i32, i32, i32
  }
}

</mosaic_0001>

<bundles_post_ra>
// kernel: window_attention_forward.1
= control target key start
LH: loop header
LB: loop body
LE: loop exit
PB: predicated region body
PF: predicated region fallthrough
CT: control target
= control target key end

     0   :  { %s2464_s0 = inlined_call_operand.vmem [shape: s32[4], index: 0, kind: input, shape index: {}]   ;;  %s2465_s1 = inlined_call_operand.vmem [shape: f32[2,16,32], index: 1, kind: input, shape index: {}]   ;;  %s2466_s2 = inlined_call_operand.vmem [shape: f32[2,16,32], index: 2, kind: input, shape index: {}]   ;;  %s2467_s3 = inlined_call_operand.vmem [shape: f32[32,32], index: 3, kind: input, shape index: {}]   ;;  %s2468_s4 = inlined_call_operand.vmem [shape: f32[1,32], index: 4, kind: input, shape index: {}]   ;;  %s2469_s5 = inlined_call_operand.vmem [shape: f32[32,32], index: 5, kind: input, shape index: {}]   ;;  %s2470_s6 = inlined_call_operand.vmem [shape: f32[1,32], index: 6, kind: input, shape index: {}]   ;;  %s2471_s7 = inlined_call_operand.vmem [shape: f32[32,32], index: 7, kind: input, shape index: {}]   ;;  %s2472_s8 = inlined_call_operand.vmem [shape: f32[1,32], index: 8, kind: input, shape index: {}]   ;;  %s2473_s9 = inlined_call_operand.vmem [shape: f32[32,32], index: 9, kind: input, shape index: {}]   ;;  %s2474_s10 = inlined_call_operand.vmem [shape: f32[1,32], index: 10, kind: input, shape index: {}]   ;;  %s2475_s11 = inlined_call_operand.hbm [shape: f32[2,4,4,32], index: 11, kind: output, shape index: {0}]   ;;  %s2476_s12 = inlined_call_operand.vmem [shape: f32[2,4,4,4,8], index: 12, kind: output, shape index: {1}]  }
   0x1   :  { %2488 = sst [smem:[#allocation20_spill]] %s2474_s10  ;;  %s18_s23 = sshll.u32 %s2464_s0, 4  ;;  %s19_s23 = int_to_ptr.vmem [resolvable:$true] %s18_s23 }
   0x2   :  { %2489 = sst [smem:[#allocation21_spill]] %s2475_s11  ;;  %s1968_s24 = scalar_lea.vmem %s19_s23, 16 }
   0x3   :  { %p1969_p0 = scmp.ne.s32.totalorder %s19_s23, %s1968_s24  ;;  %p1973_p1 = scmp.lt.s32.totalorder %s19_s23, %s19_s23 }
   0x4   :  { %p1974_p2 = scmp.lt.s32.totalorder %s1968_s24, %s1968_s24 }
   0x6   :  { %p1975_p3 = por %p1974_p2, %p1973_p1 }
   0x8   :  { %p1976_p4 = pnand %p1975_p3, %p1969_p0 }
   0xa   :  { %1979 = shalt.err (!%p1976_p4)  }
   0xb   :  { %s2078_s25 = smov [#allocation6]  }
   0xc   :  { %21 = dma.vmem_to_smem %s19_s23, 16, %s2078_s25, [#allocation5] }
   0xd   :  { %2040 = dma.done.wait [#allocation5], 16 }
   0xe   :  { %2041 = vsyncadd [#allocation5], 4294967280 }
   0xf   :  { %23 = sfence }
  0x10   :  { %24 = vsyncpa [#allocation8], 0 }
  0x11   :  { %26 = vsyncpa [#allocation8 + $0x1], 0  ;;  %s2157_s26 = smov 0   ;;  %s2159_s27 = smov 0  }
  0x12   :  { %s2161_s0 = smov 0   ;;  %s2163_s28 = smov 0  }
  0x13   :  { %s2165_s29 = smov 0   ;;  %s2167_s30 = smov 0  }
  0x14   :  { %s2169_s13 = smov 0   ;;  %s2171_s14 = smov 0  }
  0x15 LB: > { %2490 = sst [smem:[#allocation11_spill]] %s2048_s26  ;;  %s1670_s15 = sadd.s32 4294967295, %s2076_s14   ;;  %s2076_s14 = sphi %s2171_s14, %s32_s14   ;;  %s2072_s13 = sphi %s2169_s13, %s2513_s13   ;;  %s2068_s30 = sphi %s2167_s30, %s2512_s30   ;;  %s2064_s29 = sphi %s2165_s29, %s2511_s29   ;;  %s2060_s28 = sphi %s2163_s28, %s2510_s28   ;;  %s2056_s0 = sphi %s2161_s0, %s2509_s0   ;;  %s2052_s27 = sphi %s2159_s27, %s2515_s27   ;;  %s2048_s26 = sphi %s2157_s26, %s2514_s26  }
  0x16   : > { %2491 = sst [smem:[#allocation12_spill]] %s2056_s0  ;;  %s1671_s16 = sadd.s32 4294967294, %s2076_s14  }
  0x17   : > { %2492 = sst [smem:[#allocation13_spill]] %s2068_s30  ;;  %s41_s17 = sadd.s32 1, %s2068_s30 }
  0x18   : > { %2493 = sst [smem:[#allocation14_spill]] %s2072_s13  ;;  %p42_p5 = scmp.ge.s32.totalorder %s41_s17, 4 }
  0x19   : > { %2494 = sst [smem:[#allocation15_spill]] %s2076_s14  ;;  %s44_s18 = sadd.s32 1, %s2072_s13 }
  0x1a   : > { %p283_p6 = scmp.ne.s32.totalorder %s2056_s0, %s2052_s27  ;;  %p284_p7 = scmp.eq.s32.totalorder %s1670_s15, 7 }
  0x1b   : > { %s2517_s17 = smov (%p42_p5, %s41_s17), 0  ;;  %s2519_s18 = smov (!%p42_p5, %s44_s18), %s2072_s13 }
  0x1c   : > { %2495 = sst [smem:[#allocation16_spill]] %s2517_s17  ;;  %s269_s19 = ssub.s32 %s2068_s30, %s2517_s17 }
  0x1d   : > { %p2208_p8 = por %p284_p7, %p283_p6  ;;  %p46_p9 = scmp.ge.s32.totalorder %s2519_s18, 2 }
  0x1e   : > { %p289_p10 = scmp.ne.s32.totalorder %s2052_s27, %s2048_s26  ;;  %p290_p11 = scmp.eq.s32.totalorder %s1671_s16, 7 }
  0x1f   : > { %p1674_p12 = scmp.ge.s32.totalorder %s2076_s14, 1  ;;  %s2521_s18 = smov (%p46_p9, %s2519_s18), 0 }
  0x20   : > { %2497 = sst [smem:[#allocation17_spill]] %s2521_s18  ;;  %p2217_p13 = por %p290_p11, %p289_p10 }
  0x21   : > { %p376_p0 = scmp.lt.s32.totalorder %s2076_s14, 9  ;;  %s268_s22 = ssub.s32 %s2072_s13, %s2521_s18 }
  0x22   : > { %s2498_s21 = scalar_select %p2217_p13, 1, 0 }
  0x23   : > { %s273_s23 = sadd.s32 1, %s2056_s0  ;;  %s270_s24 = sor.u32 %s269_s19, %s268_s22 }
  0x24   : > { %2499 = sst [smem:[#allocation18_spill]] %s2498_s21  ;;  %p377_p1 = pnand %p1674_p12, %p376_p0 }
  0x25   : > { %p271_p2 = scmp.eq.s32.totalorder %s270_s24, 0  ;;  %s2484_s15 = sand.u32 (!%p377_p1), 1, %s2052_s27  }
  0x26   : > { %380 = sbr.rel (%p377_p1) target bundleno = 1499 (0x5db), region = 60  ;;  %p430_p3 = scmp.lt.s32.totalorder (!%p377_p1), %s2064_s29, 1 }
  0x27   : > { %s2226_s25 = scalar_select %p271_p2, %s2056_s0, %s273_s23  }
  0x28   : > { %s2232_s16 = sshll.u32 (!%p377_p1), %s2484_s15, 2  ;;  %p442_p4 = scmp.lt.s32.totalorder (!%p377_p1), %s2060_s28, 3 }
  0x29   : > { %2500 = sst [smem:[#allocation19_spill]] %s2226_s25  ;;  %s418_s10 = scalar_lea.vmem (!%p377_p1), [#allocation7], %s2232_s16 }
  0x2a   : > { %p1683_p5 = scmp.ne.s32.totalorder (!%p377_p1), %s2060_s28, 0 }
  0x2d   : > { %s431_s18 = scalar_select %p430_p3, %s2064_s29, 1 }
  0x2e   : > { %s443_s19 = scalar_select %p442_p4, %s2060_s28, 3 }
  0x2f   : > { %s1716_s22 = sshll.u32 %s431_s18, 4  ;;  %452 = sbr.rel (%p1683_p5) target bundleno = 282 (0x11a), region = 64  ;;  %v457_v0 = vld [vmem:[%s2467_s3] sm:$0xff] (!%p1683_p5)  ;;  %v458_v1 = vld [vmem:[%s2467_s3 + $0x8] sm:$0xff] (!%p1683_p5)  ;;  %v459_v2 = vld [vmem:[%s2467_s3 + $0x10] sm:$0xff] (!%p1683_p5)  ;;  %vm468_vm0 = vcmask (!%p1683_p5), 261120  }
  0x30   : > { %s2240_s17 = scalar_lea.vmem %s2465_s1, %s1716_s22  ;;  %s2245_s25 = scalar_lea.vmem %s2466_s2, %s1716_s22  ;;  %v1841_v3 = vpack.c.bf16 (!%p1683_p5), %v458_v1, %v457_v0  ;;  %v460_v4 = vld [vmem:[%s2467_s3 + $0x18] sm:$0xff] (!%p1683_p5)  ;;  %v554_v6 = vld [vmem:[%s2469_s5] sm:$0xff] (!%p1683_p5)  ;;  %v555_v8 = vld [vmem:[%s2469_s5 + $0x8] sm:$0xff] (!%p1683_p5) }
  0x31   : > { %s1680_s0 = sshll.u32 %s443_s19, 2  ;;  %v453_v5 = vld [vmem:[%s2240_s17] sm:$0xff] (!%p1683_p5)  ;;  %v1845_v7 = vpack.c.bf16 (!%p1683_p5), %v460_v4, %v459_v2  ;;  %v1849_v10 = vpack.c.bf16 (!%p1683_p5), %v555_v8, %v554_v6  ;;  %v649_v11 = vld [vmem:[%s2471_s7 + $0x8] sm:$0xff] (!%p1683_p5)  ;;  %v556_v12 = vld [vmem:[%s2469_s5 + $0x10] sm:$0xff] (!%p1683_p5) }
  0x32   : > { %s446_s21 = sadd.s32 %s1716_s22, %s1680_s0  ;;  %1765 = vmatprep.mubr.msk.f32.mxu0 (!%p1683_p5), %vm468_vm0, %v453_v5  ;;  %v648_v9 = vld [vmem:[%s2471_s7] sm:$0xff] (!%p1683_p5)  ;;  %1842 = vmatprep.subr.bf16.mxu0 (!%p1683_p5), %v1841_v3  ;;  %v557_v13 = vld [vmem:[%s2469_s5 + $0x18] sm:$0xff] (!%p1683_p5)  ;;  %v650_v17 = vld [vmem:[%s2471_s7 + $0x10] sm:$0xff] (!%p1683_p5) }
  0x33   : > { %s1682_s26 = sshll.u32 %s446_s21, 2  ;;  %1844 = vmatpush3.bf16.msra.mxu0 (!%p1683_p5), %v1841_v3  ;;  %v1853_v14 = vpack.c.bf16 (!%p1683_p5), %v557_v13, %v556_v12  ;;  %v455_v15 = vld [vmem:[%s2245_s25] sm:$0xff] (!%p1683_p5)  ;;  %1850 = vmatprep.subr.bf16.mxu1 (!%p1683_p5), %v1849_v10  ;;  %v1857_v16 = vpack.c.bf16 (!%p1683_p5), %v649_v11, %v648_v9  ;;  %v651_v18 = vld [vmem:[%s2471_s7 + $0x18] sm:$0xff] (!%p1683_p5)  ;;  %v454_v19 = vld [vmem:[%s2240_s17 + $0x8] sm:$0xff] (!%p1683_p5) }
  0x34   : > { %s2250_s11 = scalar_lea.vmem %s2476_s12, %s1682_s26  ;;  %1846 = vmatprep.subr.bf16.mxu0 (!%p1683_p5), %v1845_v7  ;;  %1852 = vmatpush3.bf16.msra.mxu1 (!%p1683_p5), %v1849_v10  ;;  %v1861_v20 = vpack.c.bf16 (!%p1683_p5), %v651_v18, %v650_v17  ;;  %v456_v21 = vld [vmem:[%s2245_s25 + $0x8] sm:$0xff] (!%p1683_p5)  ;;  %v1684_v22 = vld [vmem:[%s2468_s4] ss:$0 sm:$0xff] (!%p1683_p5) }
  0x35   : > { %1776 = vmatprep.mubr.msk.f32.mxu1 (!%p1683_p5), %vm468_vm0, %v455_v15  ;;  %1854 = vmatprep.subr.bf16.mxu1 (!%p1683_p5), %v1853_v14  ;;  %v1687_v24 = vld [vmem:[%s2470_s6] ss:$0 sm:$0xff] (!%p1683_p5) }
  0x36   : > { %v1690_v34 = vld [vmem:[%s2472_s8] ss:$0 sm:$0xff] }
  0x37   : > { %1848 = vmatpush3.bf16.msra.mxu0 %v1845_v7 }
  0x38   : > { %1858 = vmatprep.subr.bf16.mxu0 %v1857_v16  ;;  %1856 = vmatpush3.bf16.msra.mxu1 %v1853_v14 }
  0x3a   : > { %1766 = vmatmul.mubr.msk.f32.vlgmr.msra.gmra.mrb[0].mxu0 %vm468_vm0, %v454_v19 }
  0x3b   : > { %1860 = vmatpush3.bf16.msra.mxu0 %v1857_v16  ;;  %1787 = vmatprep.mubr.msk.f32.mxu0 %vm468_vm0, %v455_v15 }
  0x3c   : > { %1862 = vmatprep.subr.bf16.mxu0 %v1861_v20  ;;  %1777 = vmatmul.mubr.msk.f32.vlgmr.msra.gmra.mrb[0].mxu1 %vm468_vm0, %v456_v21 }
  0x3f   : > { %1864 = vmatpush3.bf16.msra.mxu0 %v1861_v20 }
  0x42   : > { %1788 = vmatmul.mubr.msk.f32.vlgmr.msra.gmra.mrb[2].mxu0 %vm468_vm0, %v456_v21 }
 0x10d   : > { %v1767_v23 = vpop.f32.mrb[0].mxu0 }
 0x10e   : > { %v547_v25 = vadd.f32 %v1767_v23, %v1684_v22  ;;  %v541_v26 = vpop.f32.mrb[1].mxu0 }
 0x10f   : > { %v542_v27 = vadd.f32 %v1684_v22, %v541_v26  ;;  %v1778_v28 = vpop.f32.mrb[0].mxu1 }
 0x110   : > { %v551_v29 = vmul.f32 0.35355338, %v547_v25  ;;  %v643_v30 = vadd.f32 %v1778_v28, %v1687_v24  ;;  %v637_v31 = vpop.f32.mrb[1].mxu1 }
 0x111   : > { %v550_v32 = vmul.f32 0.35355338, %v542_v27  ;;  %v638_v33 = vadd.f32 %v1687_v24, %v637_v31 }
 0x112   : > { %553 = vst.msk [vmem:[#allocation2 + $0x8] sm:$0xff] %vm468_vm0, %v551_v29  ;;  %647 = vst.msk [vmem:[#allocation3 + $0x8] sm:$0xff] %vm468_vm0, %v643_v30 }
 0x113   : > { %552 = vst.msk [vmem:[#allocation2] sm:$0xff] %vm468_vm0, %v550_v32  ;;  %646 = vst.msk [vmem:[#allocation3] sm:$0xff] %vm468_vm0, %v638_v33 }
 0x115   : > { %v1789_v35 = vpop.f32.mrb[2].mxu0 }
 0x116   : > { %v731_v36 = vadd.f32 %v1789_v35, %v1690_v34  ;;  %v725_v37 = vpop.f32.mrb[3].mxu0 }
 0x117   : > { %v726_v38 = vadd.f32 %v1690_v34, %v725_v37 }
 0x118   : > { %735 = vst.msk [vmem:[#allocation4 + $0x8] sm:$0xff] %vm468_vm0, %v731_v36 }
 0x119   : > { %734 = vst.msk [vmem:[#allocation4] sm:$0xff] %vm468_vm0, %v726_v38 }
 0x11a PF: > { %s2316_s0 = sld [smem:[#allocation6 + %s2060_s28]]  ;;  %v2079_v39 = vmov 0.0   ;;  %vm2080_vm1 = vmmov 0   ;;  %s1693_s21 = sshll.u32 %s2060_s28, 2  ;;  %vm744_vm2 = vcmask 64512   ;;  %vm821_vm3 = vcmask 60416  }
 0x11b   : > { %1790 = vmatprep.subr.mxu0 %v2079_v39  ;;  %1792 = vmatprep.mubr.msk.f32.mxu0 %vm2080_vm1, %v2079_v39  ;;  %s2081_s14 = smov 120   ;;  %s738_s15 = scalar_lea.vmem [#allocation2], %s1693_s21  ;;  %v1426_v34 = vld [vmem:[%s2473_s9] sm:$0xff]  ;;  %v1427_v35 = vld [vmem:[%s2473_s9 + $0x8] sm:$0xff]  ;;  %v2084_v36 = vmov 0.0|0.0   ;;  %v1428_v38 = vld [vmem:[%s2473_s9 + $0x10] sm:$0xff] }
 0x11c   : > { %1800 = vmatprep.subr.mxu1 %v2079_v39  ;;  %1802 = vmatprep.mubr.msk.f32.mxu1 %vm2080_vm1, %v2079_v39  ;;  %v739_v41 = vld [vmem:[%s738_s15] sm:$0xf]  ;;  %s2082_s19 = smov 112   ;;  %s2083_s22 = smov 104   ;;  %v1866_v37 = vpack.c.bf16 %v1427_v35, %v1426_v34  ;;  %vm1422_vm4 = vcmask 130048   ;;  %vm1424_vm5 = vcmask 195584  }
 0x11d   : > { %s2085_s21 = smov 8   ;;  %vm1437_vm6 = vcmask 261120   ;;  %s1712_s15 = sshll.u32 %s2064_s29, 2  ;;  %vm1511_vm7 = vcmask 257024  }
 0x11e   : > { %s2501_s18 = sld [smem:[#allocation20_spill]]  ;;  %s1538_s17 = sshll.u32 %s418_s10, 4  ;;  %s2409_s17 = int_to_ptr.vmem [resolvable:$true] %s1538_s17 }
 0x11f   : > { %s2502_s13 = sld [smem:[#allocation21_spill]] }
 0x120   : > { %s740_s26 = scalar_lea.vmem [#allocation3], %s2316_s0  ;;  %s742_s23 = scalar_lea.vmem [#allocation4], %s2316_s0 }
 0x121   : > { %v741_v40 = vld [vmem:[%s740_s26] sm:$0xff]  ;;  %s2086_s26 = smov 16  }
 0x122   : > { %909 = vrot.lane.b32.xlu0 %v741_v40, %s2081_s14  ;;  %1791 = vmatpush3.xpose.msk.msra.mxu0 %vm744_vm2, %v741_v40  ;;  %v743_v48 = vld [vmem:[%s742_s23] sm:$0xff] }
 0x123   : > { %1077 = vrot.lane.b32.xlu1 %v741_v40, %s2082_s19  ;;  %1795 = vmatprep.subr.mxu0 %v2079_v39 }
 0x125   : > { %1793 = vmatmul.mubr.msk.f32.vlgmr.msra.gmra.mrb[0].mxu0 %vm744_vm2, %v739_v41 }
 0x126   : > { %907 = vrot.lane.b32.xlu0 %v739_v41, %s2081_s14  ;;  %1797 = vmatprep.mubr.msk.f32.mxu0 %vm2080_vm1, %v2079_v39 }
 0x127   : > { %1075 = vrot.lane.b32.xlu1 %v739_v41, %s2082_s19  ;;  %1796 = vmatpush3.msra.mxu0 %v743_v48 }
 0x128   : > { %1805 = vmatprep.subr.mxu0 %v2079_v39 }
 0x12a   : > { %1244 = vrot.lane.b32.xlu0 %v741_v40, %s2083_s22 }
 0x12b   : > { %1242 = vrot.lane.b32.xlu1 %v739_v41, %s2083_s22 }
 0x194   : > { %v910_v42 = vpop.permute.xlu0 %909 }
 0x195   : > { %1801 = vmatpush3.xpose.msk.msra.mxu1 %vm744_vm2, %v910_v42  ;;  %v1078_v43 = vpop.permute.xlu1 %1077 }
 0x196   : > { %1810 = vmatprep.subr.mxu1 %v2079_v39 }
 0x198   : > { %v908_v44 = vpop.permute.xlu0 %907 }
 0x199   : > { %1803 = vmatmul.mubr.msk.f32.vlgmr.msra.gmra.mrb[0].mxu1 %vm744_vm2, %v908_v44  ;;  %v1076_v45 = vpop.permute.xlu1 %1075 }
 0x19a   : > { %1811 = vmatpush3.xpose.msk.msra.mxu1 %vm744_vm2, %v1078_v43  ;;  %1812 = vmatprep.mubr.msk.f32.mxu1 %vm2080_vm1, %v2079_v39 }
 0x19b   : > { %1820 = vmatprep.subr.mxu1 %v2079_v39 }
 0x19c   : > { %v1245_v46 = vpop.permute.xlu0 %1244 }
 0x19d   : > { %1813 = vmatmul.mubr.msk.f32.vlgmr.msra.gmra.mrb[2].mxu1 %vm744_vm2, %v1076_v45  ;;  %v1243_v47 = vpop.permute.xlu1 %1242 }
 0x19e   : > { %1821 = vmatpush3.xpose.msk.msra.mxu1 %vm744_vm2, %v1245_v46  ;;  %1822 = vmatprep.mubr.msk.f32.mxu1 %vm2080_vm1, %v2079_v39 }
 0x19f   : > { %1865 = vmatprep.subr.bf16.mxu1 %v2084_v36 }
 0x1a1   : > { %1823 = vmatmul.mubr.msk.f32.vlgmr.msra.gmra.mrb[4].mxu1 %vm744_vm2, %v1243_v47 }
 0x1a2   : > { %1838 = vmatprep.mubr.msk.f32.mxu1 %vm2080_vm1, %v2079_v39  ;;  %1867 = vmatpush3.bf16.msra.mxu1 %v1866_v37 }
 0x1a3   : > { %1868 = vmatprep.subr.bf16.mxu1 %v2084_v36 }
 0x1f8   : > { %v817_v49 = vpop.f32.mrb[0].mxu0 }
 0x1f9   : > { %v822_v50 = vsel %vm821_vm3, %v817_v49, -inf  ;;  %v1794_v51 = vpop.f32.mrb[1].mxu0 }
 0x1fa   : > { %823 = vmax.xlane.f32.xlu0 %v822_v50 }
 0x26c   : > { %v981_v52 = vpop.f32.mrb[0].mxu1 }
 0x26d   : > { %v1804_v53 = vpop.f32.mrb[1].mxu1  ;;  %v985_v54 = vsel %vm821_vm3, %v981_v52, -inf }
 0x26e   : > { %986 = vmax.xlane.f32.xlu1 %v985_v54  ;;  %v1709_v53 = vld [vmem:[%s2501_s18] ss:$0 sm:$0xff] }
 0x270   : > { %v1149_v55 = vpop.f32.mrb[2].mxu1 }
 0x271   : > { %v1814_v56 = vpop.f32.mrb[3].mxu1  ;;  %v1153_v57 = vsel %vm821_vm3, %v1149_v55, -inf }
 0x272   : > { %1154 = vmax.xlane.f32.xlu0 %v1153_v57 }
 0x274   : > { %v1316_v58 = vpop.f32.mrb[4].mxu1 }
 0x275   : > { %v1824_v59 = vpop.f32.mrb[5].mxu1  ;;  %v1320_v60 = vsel %vm821_vm3, %v1316_v58, -inf }
 0x276   : > { %1321 = vmax.xlane.f32.xlu0 %v1320_v60 }
 0x27f   : > { %999 = vrot.lane.b32.xlu1 %v743_v48, %s2081_s14  ;;  %s2087_s14 = smov 24  }
 0x287   : > { %v824_v61 = vpop.xlane.xlu0 %823 }
 0x288   : > { %v825_v62 = vsub.f32 %v817_v49, %v824_v61 }
 0x28a   : > { %v826_v63 = vmul.f32 1.442695, %v825_v62 }
 0x28c   : > { %1952 = vpow2.f32 %v826_v63 }
 0x296   : > { %v1953_v0 = vpop.eup %1952 }
 0x297   : > { %v828_v1 = vsel %vm821_vm3, %v1953_v0, 0.0 }
 0x2a3   : > { %829 = vadd.xlane.f32.xlu1 %v828_v1 }
 0x2fb   : > { %v987_v2 = vpop.xlane.xlu1 %986 }
 0x2fc   : > { %v988_v3 = vsub.f32 %v981_v52, %v987_v2 }
 0x2fe   : > { %v989_v4 = vmul.f32 1.442695, %v988_v3 }
 0x2ff   : > { %v1155_v5 = vpop.xlane.xlu0 %1154  ;;  %v1000_v17 = vpop.permute.xlu1 %999 }
 0x300   : > { %1954 = vpow2.f32 %v989_v4  ;;  %v1156_v6 = vsub.f32 %v1149_v55, %v1155_v5 }
 0x302   : > { %v1157_v7 = vmul.f32 1.442695, %v1156_v6 }
 0x303   : > { %v1322_v8 = vpop.xlane.xlu0 %1321 }
 0x304   : > { %1956 = vpow2.f32 %v1157_v7  ;;  %v1323_v9 = vsub.f32 %v1316_v58, %v1322_v8 }
 0x306   : > { %v1324_v10 = vmul.f32 1.442695, %v1323_v9 }
 0x308   : > { %1958 = vpow2.f32 %v1324_v10 }
 0x30a   : > { %v1955_v11 = vpop.eup %1954 }
 0x30b   : > { %v991_v12 = vsel %vm821_vm3, %v1955_v11, 0.0 }
 0x30c   : > { %992 = vadd.xlane.f32.xlu0 %v991_v12 }
 0x30e   : > { %v1957_v13 = vpop.eup %1956 }
 0x30f   : > { %v1159_v14 = vsel %vm821_vm3, %v1957_v13, 0.0 }
 0x310   : > { %1160 = vadd.xlane.f32.xlu1 %v1159_v14 }
 0x312   : > { %v1959_v15 = vpop.eup %1958 }
 0x313   : > { %v1326_v16 = vsel %vm821_vm3, %v1959_v15, 0.0 }
 0x314   : > { %1327 = vadd.xlane.f32.xlu0 %v1326_v16 }
 0x321   : > { %1333 = vrot.lane.b32.xlu1 %v743_v48, %s2083_s22 }
 0x32a   : > { %1166 = vrot.lane.b32.xlu0 %v743_v48, %s2082_s19  ;;  %s1534_s19 = sadd.s32 %s2060_s28, %s1712_s15  ;;  %s2504_s28 = sand.u32 1, %s2052_s27  }
 0x32b   : > { %s1713_s24 = sshll.u32 %s1534_s19, 6  ;;  %s1514_s29 = scalar_lea.sflag [#allocation8], %s2504_s28 }
 0x32c   : > { %s2407_s0 = scalar_lea.hbm %s2502_s13, %s1713_s24 }
 0x330   : > { %v830_v18 = vpop.xlane.xlu1 %829 }
 0x331   : > { %1960 = vrcp.f32 %v830_v18 }
 0x33b   : > { %v1961_v19 = vpop.eup %1960 }
 0x33c   : > { %v832_v20 = vmul.f32 %v1961_v19, %v1953_v0 }
 0x33e   : > { %833 = vst.msk [vmem:[%s2250_s11] sm:$0xf] %vm821_vm3, %v832_v20  ;;  %1798 = vmatmul.mubr.msk.f32.vlgmr.msra.gmra.mrb[2].mxu0 %vm744_vm2, %v832_v20 }
 0x33f   : > { %1806 = vmatpush3.msra.mxu0 %v1000_v17  ;;  %1807 = vmatprep.mubr.msk.f32.mxu0 %vm2080_vm1, %v2079_v39 }
 0x340   : > { %1815 = vmatprep.subr.mxu0 %v2079_v39 }
 0x399   : > { %v993_v21 = vpop.xlane.xlu0 %992 }
 0x39a   : > { %1962 = vrcp.f32 %v993_v21 }
 0x39d   : > { %v1161_v22 = vpop.xlane.xlu1 %1160 }
 0x39e   : > { %1964 = vrcp.f32 %v1161_v22 }
 0x3a1   : > { %v1328_v23 = vpop.xlane.xlu0 %1327  ;;  %v1334_v29 = vpop.permute.xlu1 %1333 }
 0x3a2   : > { %1966 = vrcp.f32 %v1328_v23 }
 0x3a4   : > { %v1963_v24 = vpop.eup %1962 }
 0x3a5   : > { %v995_v25 = vmul.f32 %v1963_v24, %v1955_v11  ;;  %v1167_v26 = vpop.permute.xlu0 %1166 }
 0x3a7   : > { %1699 = vst.msk [vmem:[%s2250_s11 + $0x4] sm:$0xf] %vm821_vm3, %v995_v25  ;;  %1808 = vmatmul.mubr.msk.f32.vlgmr.msra.gmra.mrb[4].mxu0 %vm744_vm2, %v995_v25 }
 0x3a8   : > { %v1965_v27 = vpop.eup %1964  ;;  %1816 = vmatpush3.msra.mxu0 %v1167_v26  ;;  %1817 = vmatprep.mubr.msk.f32.mxu0 %vm2080_vm1, %v2079_v39 }
 0x3a9   : > { %v1163_v28 = vmul.f32 %v1965_v27, %v1957_v13  ;;  %1825 = vmatprep.subr.mxu0 %v2079_v39 }
 0x3ab   : > { %1703 = vst.msk [vmem:[%s2250_s11 + $0x8] sm:$0xf] %vm821_vm3, %v1163_v28  ;;  %1818 = vmatmul.mubr.msk.f32.vlgmr.msra.gmra.mrb[6].mxu0 %vm744_vm2, %v1163_v28 }
 0x3ac   : > { %v1967_v30 = vpop.eup %1966  ;;  %1826 = vmatpush3.msra.mxu0 %v1334_v29  ;;  %1827 = vmatprep.mubr.msk.f32.mxu0 %vm2080_vm1, %v2079_v39  ;;  %v1429_v39 = vld [vmem:[%s2473_s9 + $0x18] sm:$0xff] }
 0x3ad   : > { %v1330_v31 = vmul.f32 %v1967_v30, %v1959_v15  ;;  %v1869_v40 = vpack.c.bf16 %v1429_v39, %v1428_v38 }
 0x3af   : > { %1707 = vst.msk [vmem:[%s2250_s11 + $0xc] sm:$0xf] %vm821_vm3, %v1330_v31  ;;  %1828 = vmatmul.mubr.msk.f32.vlgmr.msra.gmra.mrb[8].mxu0 %vm744_vm2, %v1330_v31  ;;  %1870 = vmatpush3.bf16.msra.mxu1 %v1869_v40  ;;  %s2503_s11 = smov %s2502_s13 }
 0x411   : > { %v903_v32 = vpop.f32.mrb[2].mxu0 }
 0x412   : > { %v1799_v33 = vpop.f32.mrb[3].mxu0 }
 0x47a   : > { %v1071_v41 = vpop.f32.mrb[4].mxu0 }
 0x47b   : > { %1410 = vrot.lane.b32.xlu1 %v1071_v41, %s2085_s21  ;;  %v1809_v42 = vpop.f32.mrb[5].mxu0  ;;  %s1980_s21 = scalar_lea.vmem %s2409_s17, 64 }
 0x47c   : > { %p1981_p6 = scmp.ne.s32.totalorder %s2409_s17, %s1980_s21 }
 0x47e   : > { %v1238_v43 = vpop.f32.mrb[6].mxu0  ;;  %p1982_p7 = pnand %p1981_p6, %p2208_p8 }
 0x47f   : > { %1414 = vrot.lane.b32.xlu0 %v1238_v43, %s2086_s26  ;;  %v1819_v44 = vpop.f32.mrb[7].mxu0  ;;  %s2088_s26 = smov [#allocation7]  }
 0x480   : > { %p1983_p9 = pneg %p1982_p7 }
 0x482   : > { %v1405_v45 = vpop.f32.mrb[8].mxu0 }
 0x483   : > { %1418 = vrot.lane.b32.xlu1 %v1405_v45, %s2087_s14  ;;  %v1829_v46 = vpop.f32.mrb[9].mxu0  ;;  %s1984_s14 = sshll.u32 %s2088_s26, 4  ;;  %s1985_s14 = int_to_ptr.vmem [resolvable:$false] %s1984_s14 }
 0x484   : > { %s1986_s15 = scalar_lea.vmem %s1985_s14, 128  ;;  %p1987_p10 = scmp.lt.s32.totalorder %s2409_s17, %s1985_s14 }
 0x485   : > { %p1988_p11 = scmp.lt.s32.totalorder %s1986_s15, %s1980_s21 }
 0x487   : > { %p1989_p12 = por %p1988_p11, %p1987_p10 }
 0x489   : > { %p1990_p0 = pnand %p1989_p12, %p1983_p9 }
 0x4ed   : > { %v1411_v47 = vpop.permute.xlu1 %1410 }
 0x4ee   : > { %v1421_v49 = vsel %vm744_vm2, %v903_v32, %v1411_v47 }
 0x4f1   : > { %v1415_v48 = vpop.permute.xlu0 %1414 }
 0x4f2   : > { %v1423_v50 = vsel %vm1422_vm4, %v1421_v49, %v1415_v48 }
 0x4f5   : > { %v1419_v51 = vpop.permute.xlu1 %1418 }
 0x4f6   : > { %v1425_v52 = vsel %vm1424_vm5, %v1423_v50, %v1419_v51 }
 0x4f7   : > { %1839 = vmatmul.mubr.msk.f32.vlgmr.msra.gmra.mrb[6].mxu1 %vm1437_vm6, %v1425_v52 }
 0x5ca   : > { %v1507_v54 = vpop.f32.mrb[6].mxu1 }
 0x5cb   : > { %v1508_v55 = vadd.f32 %v1709_v53, %v1507_v54  ;;  %v1840_v56 = vpop.f32.mrb[7].mxu1 }
 0x5cd   : > { %1512 = vst.msk [vmem:[%s418_s10] sm:$0xf] %vm1511_vm7, %v1508_v55 }
 0x5ce   : > { %1993 = shalt.err (!%p1990_p0)
}
 0x5cf   : > { %s1994_s10 = scalar_lea.hbm %s2407_s0, 64  ;;  %s1998_s22 = scalar_lea.hbm %s2503_s11, 512 }
 0x5d0   : > { %p1995_p1 = scmp.ne.s32.totalorder %s2407_s0, %s1994_s10  ;;  %p1999_p4 = scmp.lt.u32.totalorder %s2407_s0, %s2503_s11 }
 0x5d1   : > { %p2000_p5 = scmp.lt.u32.totalorder %s1998_s22, %s1994_s10  ;;  %p2002_p7 = scmp.lt.u32.totalorder %s1994_s10, %s2407_s0 }
 0x5d2   : > { %p1996_p2 = pnand %p1995_p1, %p2208_p8 }
 0x5d3   : > { %p2001_p6 = por %p2000_p5, %p1999_p4 }
 0x5d4   : > { %p1997_p3 = pneg %p1996_p2 }
 0x5d5   : > { %p2003_p9 = por %p2002_p7, %p2001_p6 }
 0x5d7   : > { %p2004_p10 = pnand %p2003_p9, %p1997_p3 }
 0x5d9   : > { %2007 = shalt.err (!%p2004_p10)
}
 0x5da   : > { %1871 = dma.vmem_to_hbm [thread:$0]  (%p2208_p8), %s2409_s17, 64, %s2407_s0, %s1514_s29  }
 0x5db PF: > { %s2505_s24 = sld [smem:[#allocation15_spill]]  ;;  %s2506_s30 = sld [smem:[#allocation11_spill]] }
 0x5e1   : > { %p1877_p11 = scmp.ge.s32.totalorder %s2505_s24, 2  ;;  %s1553_s13 = sand.u32 1, %s2506_s30  }
 0x5e2   : > { %s1554_s28 = scalar_lea.sflag [#allocation8], %s1553_s13 }
 0x5e3   : > { %p1874_p12 = pnand %p1877_p11, %p2217_p13 }
 0x5e5   : > { %2043 = dma.done.wait (!%p1874_p12), %s1554_s28, 64  }
 0x5e6   : > { %2045 = vsyncadd (!%p1874_p12), %s1554_s28, 4294967232  ;;  %s32_s14 = sadd.s32 1, %s2505_s24   ;;  %s2508_s21 = sld [smem:[#allocation12_spill]] }
 0x5e7   : > { %p29_p0 = scmp.ge.s32.totalorder %s32_s14, 10   ;;  %s2509_s0 = sld [smem:[#allocation19_spill]] }
 0x5e8   : > { %s2510_s28 = sld [smem:[#allocation13_spill]]  ;;  %s2511_s29 = sld [smem:[#allocation14_spill]] }
 0x5e9   : > { %s2512_s30 = sld [smem:[#allocation16_spill]]  ;;  %s2513_s13 = sld [smem:[#allocation17_spill]] }
 0x5ea   : > { %s2514_s26 = smov %s2052_s27  ;;  %31 = sbr.rel (!%p29_p0) target bundleno = 21 (0x15), region = 120 }
 0x5ec   : > { %s2515_s27 = smov %s2508_s21 }
 0x5f1   :  { %1571 = vsyncpa [#allocation8], 1 }
 0x5f2   :  { %1573 = vsyncpa [#allocation8 + $0x1], 1 }

</bundles_post_ra>
